<compile_context>
chip_gen: v7x
topology: tpu7x:2x2x1
jax: 0.10.0
libtpu: 0.0.40
codegen_flags: <defaults>
</compile_context>

<pallas_src>
import functools

import jax
import jax.numpy as jnp
from jax.experimental import pallas as pl
from jax.experimental.pallas import tpu as pltpu


# ----------------------------- Pallas kernels ------------------------------ #

def _gram_stats_kernel(xe_ref, g_ref, s_ref):
    """Per-tile BN-stat partials from the (small) input stream only.

    xe_ref: [Cin, TL] tile of the w-expanded input.
    g_ref : [Cin, Cin] per-tile Gram matrix  X X^T  (f32).
    s_ref : [Cin, 1]   per-tile column sum          (f32).

    The CK-wide recompute and the two big cross-lane reductions of the previous
    version are gone; host side recovers  s_r = w_r . colsum,  ss_r = w_r^T G w_r.
    """
    x = xe_ref[...].astype(jnp.float32)
    g_ref[...] = jax.lax.dot_general(
        x, x, (((1,), (1,)), ((), ())), preferred_element_type=jnp.float32)
    s_ref[...] = jnp.sum(x, axis=1, keepdims=True)


def _deconv_bn_relu_kernel(xe_ref, w_ref, shift_ref, o_ref, *, kW, TL):
    """Fused deconv (kernel == stride) + BN normalize + ReLU, kw-interleaved lanes.

    xe_ref   : [Cin, TL]       w-expanded input tile (lane l -> input col l//kW).
    w_ref    : [kW, CKh, Cin]  per-kw BN-scaled weights, rows ordered (co, kd, kh).
    shift_ref: [CKh, 1]        per-row BN shift (f32).
    o_ref    : [CKh, TL]       lane axis is (n, d, h, w*kW + kw)-flat, i.e. the
                               kw pixel shuffle is already folded in here.
    """
    i = pl.program_id(0)
    lane = jax.lax.broadcasted_iota(jnp.int32, xe_ref.shape, 1)
    kw_of_lane = (lane + i * TL) % kW            # global lane phase -> kw offset
    xe = xe_ref[...]
    zero = jnp.zeros_like(xe)
    acc = None
    for j in range(kW):                          # small static unroll (kW == stride)
        xm = jnp.where(kw_of_lane == j, xe, zero)
        y = jnp.dot(w_ref[j], xm, preferred_element_type=jnp.float32)
        acc = y if acc is None else acc + y
    o_ref[...] = jnp.maximum(acc + shift_ref[...], 0.0).astype(o_ref.dtype)


# ------------------------------ JAX wrapper -------------------------------- #

# Conservative VMEM budget for the pipelined blocks: v7x has 64 MiB per
# TensorCore (v5e/v6e have 128 MiB), so 40 MiB of blocks + temporaries is safe
# everywhere while still giving multi-MiB writeback DMAs per grid step.
_VMEM_BUDGET = 40 * 1024 * 1024


def _pick_lane_tile(me, per_lane_bytes, tl_req):
    """Largest 128-multiple lane tile that fits the VMEM budget (grid >= 2 if possible)."""
    tl = max(128, (int(tl_req) // 128) * 128)
    max_tl = max(128, (_VMEM_BUDGET // max(per_lane_bytes, 1)) // 128 * 128)
    tl = min(tl, max_tl)
    me_ceil = ((me + 127) // 128) * 128
    tl = min(tl, me_ceil)
    # Keep >= 2 grid steps so the ("parallel",) axis can split across v7x's two
    # TensorCores (harmless on single-TC v5e/v6e).
    if tl >= me_ceil and me_ceil >= 256:
        tl = ((me_ceil // 2 + 127) // 128) * 128
    return tl


def deconv3d_block(x, weight, bias, gamma, beta, *, kernel=2, stride=2,
                   eps=1e-5, tm=4096):
    """ConvTranspose3d(k == stride, pad=0) + BatchNorm3d (training stats) + ReLU."""
    del bias  # cancels exactly under train-mode BN mean subtraction
    assert kernel == stride, "only the non-overlapping deconv case is implemented"

    N, Cin, D, H, W = x.shape
    Cin_w, Cout, kD, kH, kW = weight.shape
    assert Cin_w == Cin
    K3 = kD * kH * kW
    CK = Cout * K3
    CKh = Cout * kD * kH
    M = N * D * H * W
    Me = M * kW
    Do, Ho, Wo = D * kD, H * kH, W * kW

    cdtype = x.dtype             # no f32 promotion: native dtype feeds the MXU
    out_dtype = x.dtype          # heavy output stream written in the final dtype
    in_b = jnp.dtype(cdtype).itemsize
    out_b = jnp.dtype(out_dtype).itemsize

    # Single derived input: channel-major, flattened spatial, each column
    # repeated kW times so pass 2 emits Wo = W*kW interleaved lanes directly.
    xT = jnp.transpose(x, (1, 0, 2, 3, 4)).reshape(Cin, M).astype(cdtype)
    xTe = jnp.repeat(xT, kW, axis=1)                          # [Cin, Me]

    # Lane-tile sizing from the actual per-step VMEM footprint (double-buffered
    # blocks plus in-kernel f32 temporaries), not a hardcoded limit.
    per_lane = (2 * Cin * in_b          # xe block, double-buffered
                + 2 * CKh * out_b       # output block, double-buffered
                + 2 * CKh * 4           # f32 dot result + accumulator
                + 2 * Cin * in_b)       # masked-x temporaries
    TL = _pick_lane_tile(Me, per_lane, tm)
    Me_pad = ((Me + TL - 1) // TL) * TL
    G = Me_pad // TL
    if Me_pad != Me:
        # Zero columns produce exact zeros everywhere (no bias in the matmul),
        # so they do not perturb the BN statistics; sliced off below.
        xTe = jnp.pad(xTe, ((0, 0), (0, Me_pad - Me)))

    footprint = per_lane * TL + 4 * (kW * CKh * Cin * in_b + CKh * 4) + (1 << 21)
    vmem_limit = int(min(max(footprint, 16 * 1024 * 1024), 60 * 1024 * 1024))
    cparams = pltpu.CompilerParams(
        dimension_semantics=("parallel",),
        vmem_limit_bytes=vmem_limit,
    )

    # ---- Pass 1: tiny per-tile Gram / column-sum partials (reads only X) ---- #
    part_g, part_s = pl.pallas_call(
        _gram_stats_kernel,
        out_shape=(
            jax.ShapeDtypeStruct((G, Cin, Cin), jnp.float32),
            jax.ShapeDtypeStruct((G, Cin, 1), jnp.float32),
        ),
        grid=(G,),
        in_specs=[pl.BlockSpec((Cin, TL), lambda i: (0, i))],
        out_specs=(
            pl.BlockSpec((None, Cin, Cin), lambda i: (i, 0, 0)),
            pl.BlockSpec((None, Cin, 1), lambda i: (i, 0, 0)),
        ),
        compiler_params=cparams,
    )(xTe)

    # ---- Tiny host-side (XLA) reduction to per-channel scale / shift -------- #
    w5 = weight.astype(jnp.float32)                           # [Cin, Cout, kD, kH, kW]
    wT = jnp.transpose(w5, (1, 2, 3, 4, 0)).reshape(CK, Cin)  # rows (co, kd, kh, kw)
    # Every original column appears kW times in xTe -> divide partials by kW.
    g_x = jnp.sum(part_g, axis=0) / kW                        # [Cin, Cin]  = X X^T
    s_x = jnp.sum(part_s[:, :, 0], axis=0) / kW               # [Cin]       = colsum(X)
    s_ck = wT @ s_x                                           # per-row sum of y
    # TODO(synk): E[y^2]-E[y]^2 can cancel badly when |mean| >> std for a channel;
    #             a shifted Gram (subtract a pilot mean) would be more robust.
    ss_ck = jnp.sum((wT @ g_x) * wT, axis=1)                  # per-row sum of y^2
    cnt = jnp.float32(K3 * M)                                 # = N * Do * Ho * Wo
    s_c = s_ck.reshape(Cout, K3).sum(axis=1)
    ss_c = ss_ck.reshape(Cout, K3).sum(axis=1)
    mean_c = s_c / cnt
    var_c = jnp.maximum(ss_c / cnt - mean_c * mean_c, 0.0)    # biased variance
    inv_std = jax.lax.rsqrt(var_c + eps)
    scale_c = gamma.astype(jnp.float32) * inv_std
    shift_c = beta.astype(jnp.float32) - mean_c * scale_c

    # BN scale folded into the tiny weight; rows ordered (co, kd, kh), one
    # [CKh, Cin] matrix per kw so the kernel can interleave kw into the lanes.
    w_scaled = w5 * scale_c[None, :, None, None, None]
    w_stk = jnp.transpose(w_scaled, (4, 1, 2, 3, 0)).reshape(kW, CKh, Cin)
    w_stk = w_stk.astype(cdtype)
    shift_rows = jnp.repeat(shift_c, kD * kH)[:, None]        # [CKh, 1] f32

    # ---- Pass 2: fused deconv + BN + ReLU, kw pre-interleaved in the lanes --- #
    kernel2 = functools.partial(_deconv_bn_relu_kernel, kW=kW, TL=TL)
    y_cols = pl.pallas_call(
        kernel2,
        out_shape=jax.ShapeDtypeStruct((CKh, Me_pad), out_dtype),
        grid=(G,),
        in_specs=[
            pl.BlockSpec((Cin, TL), lambda i: (0, i)),
            pl.BlockSpec((kW, CKh, Cin), lambda i: (0, 0, 0)),
            pl.BlockSpec((CKh, 1), lambda i: (0, 0)),
        ],
        out_specs=pl.BlockSpec((CKh, TL), lambda i: (0, i)),
        compiler_params=cparams,
    )(xTe, w_stk, shift_rows)

    # ---- Final permute keeps the Wo = W*kW minor dim intact (lane-dense) ----- #
    y7 = y_cols[:, :Me].reshape(Cout, kD, kH, N, D, H, Wo)
    out = jnp.transpose(y7, (3, 0, 4, 1, 5, 2, 6)).reshape(N, Cout, Do, Ho, Wo)
    return out.astype(x.dtype)


# ------------------------------ reference ---------------------------------- #

def _reference(x, weight, bias, gamma, beta, eps=1e-5):
    N, Cin, D, H, W = x.shape
    _, Cout, kD, kH, kW = weight.shape
    # ConvTranspose3d with stride == kernel, padding 0 (no output overlap)
    y = jnp.einsum("ncdhw,cokij->nodkhiwj", x, weight)
    y = y.reshape(N, Cout, D * kD, H * kH, W * kW) + bias[None, :, None, None, None]
    mean = jnp.mean(y, axis=(0, 2, 3, 4), keepdims=True)
    var = jnp.mean((y - mean) ** 2, axis=(0, 2, 3, 4), keepdims=True)
    yn = (y - mean) / jnp.sqrt(var + eps)
    yn = yn * gamma[None, :, None, None, None] + beta[None, :, None, None, None]
    return jnp.maximum(yn, 0.0)


# -------------------------------- main -------------------------------------- #

if __name__ == "__main__":
    key = jax.random.PRNGKey(0)
    k_x, k_w, k_b, k_g, k_be = jax.random.split(key, 5)

    N, Cin, Cout, D, H, W, K = 2, 4, 8, 4, 8, 8, 2

    x = jax.random.normal(k_x, (N, Cin, D, H, W), dtype=jnp.float32)
    # ConvTranspose3d weight shape: [in_channels, out_channels, kD, kH, kW]
    weight = 0.1 * jax.random.normal(k_w, (Cin, Cout, K, K, K), dtype=jnp.float32)
    bias = 0.1 * jax.random.normal(k_b, (Cout,), dtype=jnp.float32)
    gamma = 1.0 + 0.1 * jax.random.normal(k_g, (Cout,), dtype=jnp.float32)
    beta = 0.1 * jax.random.normal(k_be, (Cout,), dtype=jnp.float32)

    # tm=256 so the demo exercises a 4-step pipelined grid (Me = 1024 lanes).
    out = deconv3d_block(x, weight, bias, gamma, beta, kernel=K, stride=K, tm=256)
    out = jax.block_until_ready(out)

    ref = _reference(x, weight, bias, gamma, beta)
    assert out.shape == (N, Cout, D * K, H * K, W * K), out.shape
    assert jnp.allclose(out, ref, atol=1e-4, rtol=1e-4), "mismatch vs reference"

    print("KERNEL_OK")
</pallas_src>

<mosaic_0001>
module attributes {stable_mosaic.version = 11 : i64} {
  func.func @_gram_stats_kernel(%arg0: i32, %arg1: memref<4x256xf32, #tpu.memory_space<vmem>>, %arg2: memref<1x4x4xf32, #tpu.memory_space<vmem>>, %arg3: memref<1x4x1xf32, #tpu.memory_space<vmem>>) attributes {dimension_semantics = [#tpu.dimension_semantics<parallel>], iteration_bounds = array<i64: 4>, scalar_prefetch = 0 : i64, scratch_operands = 0 : i64, tpu.core_type = #tpu.core_type<tc>, window_params = [{transform_indices = @transform_0, window_bounds = array<i64: 4, 256>}, {transform_indices = @transform_1, window_bounds = array<i64: 1, 4, 4>}, {transform_indices = @transform_2, window_bounds = array<i64: 1, 4, 1>}]} {
    %c0 = arith.constant 0 : index
    %c0_0 = arith.constant 0 : index
    %0 = vector.load %arg1[%c0, %c0_0] : memref<4x256xf32, #tpu.memory_space<vmem>>, vector<4x256xf32>
    %cst = arith.constant dense<0.000000e+00> : vector<4x4xf32>
    %1 = tpu.matmul %0, %0, %cst {dimension_numbers = #tpu.dot_dimension_numbers<[1], [1], [0], [0], [0, 0, 1, 0], [], []>} : vector<4x256xf32>, vector<4x256xf32>, vector<4x4xf32> -> vector<4x4xf32>
    %c0_1 = arith.constant 0 : index
    %c0_2 = arith.constant 0 : index
    %c0_3 = arith.constant 0 : index
    %2 = vector.load %arg2[%c0_1, %c0_2, %c0_3] : memref<1x4x4xf32, #tpu.memory_space<vmem>>, vector<1x4x4xf32>
    %3 = vector.shape_cast %2 : vector<1x4x4xf32> to vector<4x4xf32>
    %4 = vector.shape_cast %1 : vector<4x4xf32> to vector<1x4x4xf32>
    tpu.vector_store %arg2[%c0_1, %c0_2, %c0_3], %4 {strides = array<i32>} : memref<1x4x4xf32, #tpu.memory_space<vmem>>, vector<1x4x4xf32>,
    %cst_4 = arith.constant dense<0.000000e+00> : vector<4xf32>
    %5 = vector.multi_reduction <add>, %0, %cst_4 [1] : vector<4x256xf32> to vector<4xf32>
    %6 = vector.shape_cast %5 : vector<4xf32> to vector<4x1xf32>
    %c0_5 = arith.constant 0 : index
    %c0_6 = arith.constant 0 : index
    %c0_7 = arith.constant 0 : index
    %7 = vector.load %arg3[%c0_5, %c0_6, %c0_7] : memref<1x4x1xf32, #tpu.memory_space<vmem>>, vector<1x4x1xf32>
    %8 = vector.shape_cast %7 : vector<1x4x1xf32> to vector<4x1xf32>
    %9 = vector.shape_cast %6 : vector<4x1xf32> to vector<1x4x1xf32>
    tpu.vector_store %arg3[%c0_5, %c0_6, %c0_7], %9 {strides = array<i32>} : memref<1x4x1xf32, #tpu.memory_space<vmem>>, vector<1x4x1xf32>,
    return
  }
  func.func @transform_0(%arg0: i32) -> (i32, i32) {
    %c0_i32 = arith.constant 0 : i32
    %c0_i32_0 = arith.constant 0 : i32
    return %c0_i32, %arg0 : i32, i32
  }
  func.func @transform_1(%arg0: i32) -> (i32, i32, i32) {
    %c0_i32 = arith.constant 0 : i32
    %c0_i32_0 = arith.constant 0 : i32
    %c0_i32_1 = arith.constant 0 : i32
    return %arg0, %c0_i32, %c0_i32_0 : i32, i32, i32
  }
  func.func @transform_2(%arg0: i32) -> (i32, i32, i32) {
    %c0_i32 = arith.constant 0 : i32
    %c0_i32_0 = arith.constant 0 : i32
    %c0_i32_1 = arith.constant 0 : i32
    return %arg0, %c0_i32, %c0_i32_0 : i32, i32, i32
  }
}

</mosaic_0001>

<bundles_post_ra>
// kernel: tpu_custom_call.1
= control target key start
LH: loop header
LB: loop body
LE: loop exit
PB: predicated region body
PF: predicated region fallthrough
CT: control target
= control target key end

     0   :  { %8 = vsyncpa [#allocation3], 0  ;;  %s713_s0 = inlined_call_operand.hbm [shape: f32[4,1024], index: 0, kind: input, shape index: {}]   ;;  %s714_s1 = inlined_call_operand.hbm [shape: f32[4,4,4], index: 1, kind: output, shape index: {0}]   ;;  %s715_s2 = inlined_call_operand.vmem [shape: f32[4,4,1], index: 2, kind: output, shape index: {1}]  }
   0x1   :  { %10 = vsyncpa [#allocation3 + $0x1], 0 }
   0x2   :  { %11 = vsyncpa [#allocation4], 0 }
   0x3   :  { %13 = vsyncpa [#allocation4 + $0x1], 0  ;;  %s548_s9 = smov 0   ;;  %s550_s10 = smov 0  }
   0x4   :  { %s552_s11 = smov 0   ;;  %s554_s12 = smov 0  }
   0x5 LB: > { %s569_s13 = sadd.s32 4294967295, %s529_s12   ;;  %s371_s14 = sadd.s32 4294967294, %s529_s12   ;;  %s529_s12 = sphi %s554_s12, %s729_s12   ;;  %s525_s11 = sphi %s552_s11, %s728_s11   ;;  %s521_s10 = sphi %s550_s10, %s727_s10   ;;  %s517_s9 = sphi %s548_s9, %s726_s9  }
   0x6   : > { %s573_s15 = sadd.s32 1, %s529_s12   ;;  %s26_s16 = sadd.s32 1, %s525_s11 }
   0x7   : > { %s23_s17 = ssub.s32 %s529_s12, %s573_s15  ;;  %p33_p0 = scmp.ne.s32.totalorder %s525_s11, %s521_s10 }
   0x8   : > { %p24_p1 = scmp.eq.s32.totalorder %s23_s17, 0  ;;  %p34_p2 = scmp.eq.s32.totalorder %s529_s12, 0 }
   0x9   : > { %p39_p3 = scmp.ne.s32.totalorder %s521_s10, %s517_s9  ;;  %p40_p4 = scmp.eq.s32.totalorder %s569_s13, 0 }
   0xa   : > { %s585_s18 = scalar_select %p24_p1, %s525_s11, %s26_s16  }
   0xb   : > { %p587_p5 = por %p34_p2, %p33_p0  ;;  %p591_p6 = por %p40_p4, %p39_p3 }
   0xc   : > { %p63_p7 = scmp.eq.s32.totalorder %s569_s13, 3  ;;  %p69_p8 = scmp.eq.s32.totalorder %s371_s14, 3 }
   0xd   : > { %p398_p9 = scmp.lt.s32.totalorder %s529_s12, 4  ;;  %s115_s23 = sand.u32 1, %s525_s11  }
   0xe   : > { %p597_p10 = por %p63_p7, %p33_p0  ;;  %p601_p11 = por %p69_p8, %p39_p3 }
   0xf   : > { %s385_s24 = sshll.u32 %s529_s12, 7  ;;  %s374_s25 = sshll.u32 %s115_s23, 3 }
  0x10   : > { %s719_s21 = scalar_select %p597_p10, 1, 0 }
  0x11   : > { %s720_s22 = scalar_select %p601_p11, 1, 0 }
  0x12   : > { %s610_s28 = scalar_lea.hbm %s713_s0, %s385_s24  ;;  %s119_s29 = scalar_lea.vmem [#allocation2], %s374_s25 }
  0x13   : > { %s127_s30 = sshll.u32 %s119_s29, 4  ;;  %p614_p12 = pnand %p398_p9, %p587_p5  ;;  %s618_s30 = int_to_ptr.vmem [resolvable:$true] %s127_s30 }
  0x14   : > { %s116_s4 = scalar_lea.sflag [#allocation3], %s115_s23  ;;  %s433_s5 = scalar_lea.hbm %s610_s28, 128 }
  0x15   : > { %p434_p1 = scmp.ne.s32.totalorder %s610_s28, %s433_s5  ;;  %p435_p2 = pneg %p614_p12 }
  0x16   : > { %s438_s8 = scalar_lea.hbm %s713_s0, 512  ;;  %p439_p5 = scmp.lt.u32.totalorder %s610_s28, %s713_s0 }
  0x17   : > { %p436_p3 = pnand %p435_p2, %p434_p1  ;;  %p440_p7 = scmp.lt.u32.totalorder %s438_s8, %s433_s5 }
  0x18   : > { %p442_p9 = scmp.lt.u32.totalorder %s433_s5, %s610_s28 }
  0x19   : > { %p437_p4 = pneg %p436_p3  ;;  %p441_p8 = por %p440_p7, %p439_p5 }
  0x1b   : > { %p443_p13 = por %p442_p9, %p441_p8 }
  0x1d   : > { %p444_p0 = pnand %p443_p13, %p437_p4 }
  0x1f   : > { %447 = shalt.err (!%p444_p0)
}
  0x20   : > { %s448_s17 = scalar_lea.vmem %s618_s30, 128  ;;  %s531_s19 = smov [#allocation2]  }
  0x21   : > { %p449_p1 = scmp.ne.s32.totalorder %s618_s30, %s448_s17  ;;  %s453_s23 = sshll.u32 %s531_s19, 4  ;;  %s454_s23 = int_to_ptr.vmem [resolvable:$false] %s453_s23 }
  0x22   : > { %s455_s24 = scalar_lea.vmem %s454_s23, 256  ;;  %p456_p10 = scmp.lt.s32.totalorder %s618_s30, %s454_s23 }
  0x23   : > { %p451_p3 = pnand %p449_p1, %p435_p2  ;;  %p457_p5 = scmp.lt.s32.totalorder %s455_s24, %s448_s17 }
  0x25   : > { %p452_p11 = pneg %p451_p3  ;;  %p458_p7 = por %p457_p5, %p456_p10 }
  0x27   : > { %p459_p8 = pnand %p458_p7, %p452_p11 }
  0x29   : > { %462 = shalt.err (!%p459_p8)
}
  0x2a   : > { %393 = dma.hbm_to_vmem [thread:$0]  (!%p614_p12), %s610_s28, 128, %s618_s30, %s116_s4  }
  0x2b   : > { %p722_p13 = scmp.lt.s32.totalorder %s529_s12, 5  ;;  %p723_p0 = scmp.ge.s32.totalorder %s529_s12, 1 }
  0x2d   : > { %p133_p2 = pnand %p723_p0, %p722_p13 }
  0x2e   : > { %s652_s25 = sand.u32 (!%p133_p2), 1, %s521_s10  }
  0x2f   : > { %136 = sbr.rel (%p133_p2) target bundleno = 288 (0x120), region = 24  ;;  %s378_s26 = sshll.u32 (!%p133_p2), %s652_s25, 3 }
  0x30   : > { %s139_s27 = scalar_lea.sflag (!%p133_p2), [#allocation3], %s652_s25  ;;  %s142_s29 = scalar_lea.vmem (!%p133_p2), [#allocation2], %s378_s26 }
  0x36   : > { %508 = dma.done.wait (%p591_p6), %s139_s27, 128  }
  0x37   : > { %510 = vsyncadd (%p591_p6), %s139_s27, 4294967168  ;;  %vm248_vm0 = vcmask 1043456   ;;  %v172_v0 = vld [vmem:[%s142_s29] sm:$0xff]  ;;  %p168_p10 = scmp.lt.s32.totalorder %s569_s13, 3  ;;  %vm254_vm1 = vcmask 3072   ;;  %s379_s5 = sshll.u32 %s652_s25, 2 }
  0x38   : > { %v174_v1 = vcombine.high %v172_v0, %v172_v0  ;;  %v249_v2 = vsel %vm248_vm0, %v172_v0, 0.0  ;;  %s382_s6 = sshll.u32 %s569_s13, 6  ;;  %s160_s7 = scalar_lea.vmem [#allocation5], %s379_s5  ;;  %vm246_vm2 = vcmask 27648  }
  0x39   : > { %s169_s28 = scalar_select %p168_p10, %s569_s13, 3 }
  0x3a   : > { %176 = vmatprep.subr.mxu0 %v174_v1  ;;  %240 = vmatprep.mubr.f32.mxu0 %v174_v1  ;;  %v250_v3 = vsel %vm248_vm0, %v174_v1, 0.0  ;;  %s274_s8 = sshll.u32 %s160_s7, 4  ;;  %s670_s17 = scalar_lea.hbm %s714_s1, %s382_s6  ;;  %s672_s8 = int_to_ptr.vmem [resolvable:$true] %s274_s8 }
  0x3b   : > { %177 = vmatpush1.xpose.msra.mxu0 %v172_v0  ;;  %v251_v4 = vadd.f32 %v250_v3, %v249_v2  ;;  %s380_s20 = sshll.u32 %s169_s28, 2  ;;  %s257_s19 = scalar_lea.sflag [#allocation4], %s652_s25 }
  0x3c   : > { %s171_s4 = scalar_lea.vmem %s715_s2, %s380_s20  ;;  %s463_s23 = scalar_lea.vmem %s672_s8, 64 }
  0x3d   : > { %252 = vadd.xlane.f32.xlu0 %v251_v4  ;;  %p464_p6 = scmp.ne.s32.totalorder %s672_s8, %s463_s23  ;;  %p724_p11 = scmp.ne.s32.totalorder %s719_s21, 0 }
  0x3e   : > { %241 = vmatmul.mubr.f32.vlgmr.msra.gmra.mrb[0].mxu0 %v172_v0  ;;  %s532_s13 = smov [#allocation5]  }
  0x3f   : > { %p465_p12 = pnand %p464_p6, %p724_p11  ;;  %s467_s24 = sshll.u32 %s532_s13, 4  ;;  %s468_s24 = int_to_ptr.vmem [resolvable:$false] %s467_s24 }
  0x40   : > { %s469_s26 = scalar_lea.vmem %s468_s24, 128  ;;  %p470_p9 = scmp.lt.s32.totalorder %s672_s8, %s468_s24 }
  0x41   : > { %p466_p4 = pneg %p465_p12  ;;  %p471_p1 = scmp.lt.s32.totalorder %s469_s26, %s463_s23 }
  0x43   : > { %p472_p3 = por %p471_p1, %p470_p9 }
  0x45   : > { %p473_p5 = pnand %p472_p3, %p466_p4 }
  0xca   : > { %v253_v5 = vpop.xlane.xlu0 %252 }
  0xcb   : > { %255 = vst.msk [vmem:[%s171_s4] sm:$0xf] %vm254_vm1, %v253_v5 }
 0x111   : > { %v242_v6 = vpop.f32.mrb[0].mxu0 }
 0x112   : > { %247 = vst.msk [vmem:[%s160_s7] sm:$0xf] %vm246_vm2, %v242_v6  ;;  %v244_v7 = vpop.f32.mrb[1].mxu0 }
 0x113   : > { %476 = shalt.err (!%p473_p5)
}
 0x114   : > { %s477_s25 = scalar_lea.hbm %s670_s17, 64  ;;  %s481_s28 = scalar_lea.hbm %s714_s1, 256 }
 0x115   : > { %p478_p7 = scmp.ne.s32.totalorder %s670_s17, %s477_s25  ;;  %p482_p0 = scmp.lt.u32.totalorder %s670_s17, %s714_s1 }
 0x116   : > { %p483_p2 = scmp.lt.u32.totalorder %s481_s28, %s477_s25  ;;  %p485_p6 = scmp.lt.u32.totalorder %s477_s25, %s670_s17 }
 0x117   : > { %p479_p8 = pnand %p478_p7, %p724_p11 }
 0x118   : > { %p484_p10 = por %p483_p2, %p482_p0 }
 0x119   : > { %p480_p13 = pneg %p479_p8 }
 0x11a   : > { %p486_p12 = por %p485_p6, %p484_p10 }
 0x11c   : > { %p487_p4 = pnand %p486_p12, %p480_p13 }
 0x11e   : > { %490 = shalt.err (!%p487_p4)
}
 0x11f   : > { %388 = dma.vmem_to_hbm [thread:$0]  (%p724_p11), %s672_s8, 64, %s670_s17, %s257_s19  }
 0x120 PF: > { %p399_p9 = scmp.ge.s32.totalorder %s529_s12, 2  ;;  %s289_s3 = sand.u32 1, %s517_s9  }
 0x121   : > { %p725_p1 = scmp.ne.s32.totalorder %s720_s22, 0  ;;  %s290_s4 = scalar_lea.sflag [#allocation4], %s289_s3 }
 0x123   : > { %p395_p3 = pnand %p399_p9, %p725_p1 }
 0x125   : > { %512 = dma.done.wait (!%p395_p3), %s290_s4, 64  }
 0x126   : > { %514 = vsyncadd (!%p395_p3), %s290_s4, 4294967232  ;;  %p16_p5 = scmp.ge.s32.totalorder %s573_s15, 6   ;;  %s726_s9 = smov %s521_s10 }
 0x127   : > { %s727_s10 = smov %s525_s11  ;;  %s728_s11 = smov %s585_s18 }
 0x128   : > { %s729_s12 = smov %s573_s15  ;;  %18 = sbr.rel (!%p16_p5) target bundleno = 5 (0x5), region = 81 }
 0x12f   :  { %302 = vsyncpa [#allocation3], 1 }
 0x130   :  { %304 = vsyncpa [#allocation3 + $0x1], 1 }
 0x131   :  { %305 = vsyncpa [#allocation4], 1 }
 0x132   :  { %307 = vsyncpa [#allocation4 + $0x1], 1 }

</bundles_post_ra>
